<compile_context>
chip_gen: v6e
topology: v6e:2x2x1
jax: 0.10.0
libtpu: 0.0.40
codegen_flags: <defaults>
</compile_context>

<pallas_src>
import numpy as np
import jax
import jax.numpy as jnp
from jax.experimental import pallas as pl
from jax.experimental.pallas import tpu as pltpu

EPS = 1e-8
LOG_EPS = float(np.log(EPS))          # logstd clamp: [log(EPS), -log(EPS)]


# ----------------------------------------------------------------------------
# Fused Pallas kernel
# ----------------------------------------------------------------------------
def _elu(x):
    # ELU(alpha=1): x if x > 0 else exp(x) - 1   (safe: exp only of min(x,0))
    return jnp.where(x > 0, x, jnp.exp(jnp.minimum(x, 0.0)) - 1.0)


def mirt_vae_kernel(x_ref, w1t_ref, b1_ref, w2t_ref, b2_ref,
                    wht_ref, bh_ref, ldt_ref, thr_ref, mt_ref, c_ref,
                    eps_ref,
                    muls_ref, z_ref, probs_ref):
    L = muls_ref.shape[1] // 2          # latent dim
    RL = eps_ref.shape[1]               # R * L  (replicas packed on lanes)

    # ---- encoder -------------------------------------------------------
    x = x_ref[...]
    h = _elu(jnp.dot(x, w1t_ref[...], preferred_element_type=jnp.float32)
             + b1_ref[...])
    h = _elu(jnp.dot(h, w2t_ref[...], preferred_element_type=jnp.float32)
             + b2_ref[...])

    # fused mu|logstd head; weights are pre-replicated along lanes so
    # head[:, :RL] == mu tiled R times, head[:, RL:] == logstd tiled R times.
    head = jnp.dot(h, wht_ref[...], preferred_element_type=jnp.float32) + bh_ref[...]
    mu_t = head[:, :RL]
    ls_t = jnp.clip(head[:, RL:], LOG_EPS, -LOG_EPS)

    # one lane-packed store of the (single-copy) encoder outputs: [mu | logstd]
    muls_ref[...] = jnp.concatenate([mu_t[:, :L], ls_t[:, :L]], axis=-1)

    # ---- reparameterize: all R replicas at once, lane-packed -----------
    z = mu_t + jnp.exp(ls_t) * eps_ref[...]          # (tb, R*L)
    z_ref[...] = z

    # ---- decode: one matmul pair through block-diagonal weights --------
    act = jnp.dot(z, ldt_ref[...], preferred_element_type=jnp.float32) + thr_ref[...]
    cum = jax.nn.sigmoid(act)                        # (tb, R*T)
    probs = jnp.dot(cum, mt_ref[...], preferred_element_type=jnp.float32) + c_ref[...]
    probs_ref[...] = jnp.clip(probs, EPS, 1.0 - EPS)  # (tb, R*out_dim) lane-dense


# ----------------------------------------------------------------------------
# Wrapper
# ----------------------------------------------------------------------------
def _cdiv(a, b):
    return -(-a // b)


def _round_up(a, m):
    return _cdiv(a, m) * m


def _choose_tiling(batch, max_tile=1024, split_threshold=256):
    """Row-tile size + number of grid steps.

    Small batches: single full-array tile (no forced split; v5e/v6e have one
    TensorCore and the block==full-array exemption covers ragged sizes).
    Large batches: >=2 balanced tiles (both v7x TCs get work), rows rounded to
    a multiple of 8 (sublane constraint), capped at max_tile rows per tile.
    Per-tile VMEM at tb=1024 is only a few MB, far under scoped limits.
    """
    if batch < split_threshold:
        return batch, 1
    n_tiles = max(2, _cdiv(batch, max_tile))
    tb = _round_up(_cdiv(batch, n_tiles), 8)
    return tb, _cdiv(batch, tb)


def mirt_vae_forward(x, params, eps, mc_samples, iw_samples, *, max_tile=1024):
    """Returns (probs, mu, logstd, z) with shapes matching the PyTorch module."""
    B, D_in = x.shape
    H1 = params["w1t"].shape[1]
    H2 = params["w2t"].shape[1]
    L = params["wmut"].shape[1]
    T = params["ldt"].shape[1]
    out_dim = params["mt"].shape[1]
    R = iw_samples * mc_samples

    tb, n_tiles = _choose_tiling(B, max_tile)
    Bp = tb * n_tiles

    # lane-packed eps: (Bp, R*L); replica r occupies lanes [r*L, (r+1)*L)
    eps_p = eps.reshape(R, B, L).transpose(1, 0, 2).reshape(B, R * L)
    x_p = x
    if Bp != B:
        x_p = jnp.pad(x, ((0, Bp - B), (0, 0)))
        eps_p = jnp.pad(eps_p, ((0, Bp - B), (0, 0)))

    # fused + lane-replicated mu|logstd head  (H2, 2*R*L)
    wht = jnp.concatenate([jnp.tile(params["wmut"], (1, R)),
                           jnp.tile(params["wlst"], (1, R))], axis=1)
    bh = jnp.concatenate([jnp.tile(params["bmu"], (1, R)),
                          jnp.tile(params["bls"], (1, R))], axis=1)
    # block-diagonal decoder weights acting on lane-packed replicas
    eyeR = jnp.eye(R, dtype=jnp.float32)
    ldt_bd = jnp.kron(eyeR, params["ldt"])           # (R*L, R*T)
    mt_bd = jnp.kron(eyeR, params["mt"])             # (R*T, R*out_dim)
    thr_t = jnp.tile(params["thr"], (1, R))          # (1, R*T)
    c_t = jnp.tile(params["c"], (1, R))              # (1, R*out_dim)

    full = lambda shp: pl.BlockSpec(shp, lambda i: (0, 0))   # resident weights
    row = lambda w: pl.BlockSpec((tb, w), lambda i: (i, 0))  # batch-row tiles

    muls, z_p, probs_p = pl.pallas_call(
        mirt_vae_kernel,
        out_shape=(jax.ShapeDtypeStruct((Bp, 2 * L), jnp.float32),
                   jax.ShapeDtypeStruct((Bp, R * L), jnp.float32),
                   jax.ShapeDtypeStruct((Bp, R * out_dim), jnp.float32)),
        grid_spec=pltpu.PrefetchScalarGridSpec(
            num_scalar_prefetch=0,
            grid=(n_tiles,),
            in_specs=[
                row(D_in),
                full((D_in, H1)), full((1, H1)),
                full((H1, H2)), full((1, H2)),
                full((H2, 2 * R * L)), full((1, 2 * R * L)),
                full((R * L, R * T)), full((1, R * T)),
                full((R * T, R * out_dim)), full((1, R * out_dim)),
                row(R * L),
            ],
            out_specs=[row(2 * L), row(R * L), row(R * out_dim)],
        ),
        compiler_params=pltpu.CompilerParams(dimension_semantics=("parallel",)),
    )(x_p, params["w1t"], params["b1"], params["w2t"], params["b2"],
      wht, bh, ldt_bd, thr_t, mt_bd, c_t, eps_p)

    mu = muls[:B, :L]
    ls = muls[:B, L:]
    z = z_p[:B].reshape(B, R, L).transpose(1, 0, 2).reshape(
        iw_samples, mc_samples, B, L)
    probs = probs_p[:B].reshape(B, R, out_dim).transpose(1, 0, 2).reshape(
        iw_samples, mc_samples, B, out_dim)
    # expand(iw, mc, B, L) of encoder outputs -- pure broadcast glue
    mu_e = jnp.broadcast_to(mu, (iw_samples, mc_samples, B, L))
    ls_e = jnp.broadcast_to(ls, (iw_samples, mc_samples, B, L))
    return probs, mu_e, ls_e, z


# ----------------------------------------------------------------------------
# Deterministic parameter construction
# ----------------------------------------------------------------------------
def logistic_thresholds(n_cat):
    p = np.arange(1, n_cat) / float(n_cat)
    return np.log(p / (1.0 - p)).astype(np.float32)


def xavier_uniform(key, fan_out, fan_in):
    lim = np.sqrt(6.0 / (fan_in + fan_out))
    return jax.random.uniform(key, (fan_out, fan_in), jnp.float32, -lim, lim)


def build_params(key, input_dim, inf_dims, latent_dim, n_cats):
    n_items = len(n_cats)
    T = int(sum(n - 1 for n in n_cats))
    out_dim = T + n_items
    H1, H2 = inf_dims

    ks = jax.random.split(key, 8)
    w1 = xavier_uniform(ks[0], H1, input_dim)
    b1 = jax.random.uniform(ks[1], (1, H1), jnp.float32, -0.1, 0.1)
    w2 = xavier_uniform(ks[2], H2, H1)
    b2 = jax.random.uniform(ks[3], (1, H2), jnp.float32, -0.1, 0.1)
    wmu = xavier_uniform(ks[4], latent_dim, H2)
    bmu = jnp.zeros((1, latent_dim), jnp.float32)
    wls = xavier_uniform(ks[5], latent_dim, H2)
    bls = jnp.zeros((1, latent_dim), jnp.float32)
    # loadings: Linear(latent, n_items, bias=False), xavier init (Q=None, A=None)
    lw = xavier_uniform(ks[6], n_items, latent_dim)

    # D: block_diag of ones((n_cat-1, 1)) columns -> (T, n_items)
    D = np.zeros((T, n_items), np.float32)
    r = 0
    for j, nc in enumerate(n_cats):
        D[r:r + (nc - 1), j] = 1.0
        r += nc - 1

    # intercepts (Bias): hstack of logistic thresholds, length T
    thr = np.concatenate([logistic_thresholds(nc) for nc in n_cats])[None, :]

    # static scatter -> matmul rewrite for (upper_probs - lower_probs)
    one_idxs = np.cumsum(n_cats) - 1
    zero_idxs = one_idxs - (np.asarray(n_cats) - 1)
    upper_pos = np.delete(np.arange(out_dim), one_idxs)
    lower_pos = np.delete(np.arange(out_dim), zero_idxs)
    M = np.zeros((out_dim, T), np.float32)
    M[upper_pos, np.arange(T)] += 1.0
    M[lower_pos, np.arange(T)] -= 1.0
    c = np.zeros((1, out_dim), np.float32)
    c[0, one_idxs] = 1.0

    lt = lw.T                                    # (L, n_items)
    dt = jnp.asarray(D.T)                        # (n_items, T)

    return {
        "w1t": w1.T, "b1": b1, "w2t": w2.T, "b2": b2,
        "wmut": wmu.T, "bmu": bmu, "wlst": wls.T, "bls": bls,
        "lt": lt, "dt": dt,                      # kept for the reference path
        "ldt": jnp.dot(lt, dt),                  # (L, T) folded loadings @ D.T
        "thr": jnp.asarray(thr),                 # (1, T)
        "mt": jnp.asarray(M.T),                  # (T, out_dim)
        "c": jnp.asarray(c),                     # (1, out_dim)
    }


# ----------------------------------------------------------------------------
# Pure-JAX reference for verification (mirrors the PyTorch op order)
# ----------------------------------------------------------------------------
def reference_forward(x, params, eps, mc, iw):
    h = jax.nn.elu(x @ params["w1t"] + params["b1"])
    h = jax.nn.elu(h @ params["w2t"] + params["b2"])
    mu = h @ params["wmut"] + params["bmu"]
    ls = jnp.clip(h @ params["wlst"] + params["bls"], LOG_EPS, -LOG_EPS)
    B, L = mu.shape
    mu_e = jnp.broadcast_to(mu, (iw, mc, B, L))
    ls_e = jnp.broadcast_to(ls, (iw, mc, B, L))
    z = mu_e + jnp.exp(ls_e) * eps
    cum = jax.nn.sigmoid((z @ params["lt"]) @ params["dt"] + params["thr"])
    probs = jnp.clip(cum @ params["mt"] + params["c"], EPS, 1.0 - EPS)
    return probs, mu_e, ls_e, z


def _run_and_check(key, params, input_dim, latent_dim, batch, mc, iw):
    kx, ke = jax.random.split(key)
    x = jax.random.normal(kx, (batch, input_dim), jnp.float32)
    eps = jax.random.normal(ke, (iw, mc, batch, latent_dim), jnp.float32)

    probs, mu, logstd, z = mirt_vae_forward(x, params, eps, mc, iw)
    jax.block_until_ready((probs, mu, logstd, z))

    r_probs, r_mu, r_ls, r_z = reference_forward(x, params, eps, mc, iw)
    np.testing.assert_allclose(np.asarray(probs), np.asarray(r_probs),
                               rtol=1e-5, atol=1e-5)
    np.testing.assert_allclose(np.asarray(z), np.asarray(r_z),
                               rtol=1e-5, atol=1e-5)
    np.testing.assert_allclose(np.asarray(mu), np.asarray(r_mu),
                               rtol=1e-5, atol=1e-5)
    np.testing.assert_allclose(np.asarray(logstd), np.asarray(r_ls),
                               rtol=1e-5, atol=1e-5)


# ----------------------------------------------------------------------------
if __name__ == "__main__":
    # small shapes consistent with the module
    input_dim = 32
    inf_dims = [64, 32]
    latent_dim = 8
    n_cats = [2, 3, 4, 3] * 4            # 16 items, T = 32, out_dim = 48

    key = jax.random.PRNGKey(0)
    kp, k1, k2 = jax.random.split(key, 3)
    params = build_params(kp, input_dim, inf_dims, latent_dim, n_cats)

    # small batch: single full-array tile, R = 6 replicas
    _run_and_check(k1, params, input_dim, latent_dim, batch=24, mc=2, iw=3)
    # larger batch: exercises the 2-tile split + zero-padding path, R = 4
    _run_and_check(k2, params, input_dim, latent_dim, batch=300, mc=2, iw=2)

    print("KERNEL_OK")
</pallas_src>

<mosaic_0001>
module attributes {stable_mosaic.version = 11 : i64} {
  func.func @mirt_vae_kernel(%arg0: i32, %arg1: memref<24x32xf32, #tpu.memory_space<vmem>>, %arg2: memref<32x64xf32, #tpu.memory_space<vmem>>, %arg3: memref<1x64xf32, #tpu.memory_space<vmem>>, %arg4: memref<64x32xf32, #tpu.memory_space<vmem>>, %arg5: memref<1x32xf32, #tpu.memory_space<vmem>>, %arg6: memref<32x96xf32, #tpu.memory_space<vmem>>, %arg7: memref<1x96xf32, #tpu.memory_space<vmem>>, %arg8: memref<48x192xf32, #tpu.memory_space<vmem>>, %arg9: memref<1x192xf32, #tpu.memory_space<vmem>>, %arg10: memref<192x288xf32, #tpu.memory_space<vmem>>, %arg11: memref<1x288xf32, #tpu.memory_space<vmem>>, %arg12: memref<24x48xf32, #tpu.memory_space<vmem>>, %arg13: memref<24x16xf32, #tpu.memory_space<vmem>>, %arg14: memref<24x48xf32, #tpu.memory_space<vmem>>, %arg15: memref<24x288xf32, #tpu.memory_space<vmem>>) attributes {dimension_semantics = [#tpu.dimension_semantics<parallel>], iteration_bounds = array<i64: 1>, scalar_prefetch = 0 : i64, scratch_operands = 0 : i64, tpu.core_type = #tpu.core_type<tc>, window_params = [{transform_indices = @transform_0, window_bounds = array<i64: 24, 32>}, {pipeline_mode = #tpu.pipeline_mode<synchronous>, transform_indices = @transform_1, window_bounds = array<i64: 32, 64>}, {pipeline_mode = #tpu.pipeline_mode<synchronous>, transform_indices = @transform_2, window_bounds = array<i64: 1, 64>}, {pipeline_mode = #tpu.pipeline_mode<synchronous>, transform_indices = @transform_3, window_bounds = array<i64: 64, 32>}, {pipeline_mode = #tpu.pipeline_mode<synchronous>, transform_indices = @transform_4, window_bounds = array<i64: 1, 32>}, {pipeline_mode = #tpu.pipeline_mode<synchronous>, transform_indices = @transform_5, window_bounds = array<i64: 32, 96>}, {pipeline_mode = #tpu.pipeline_mode<synchronous>, transform_indices = @transform_6, window_bounds = array<i64: 1, 96>}, {pipeline_mode = #tpu.pipeline_mode<synchronous>, transform_indices = @transform_7, window_bounds = array<i64: 48, 192>}, {pipeline_mode = #tpu.pipeline_mode<synchronous>, transform_indices = @transform_8, window_bounds = array<i64: 1, 192>}, {pipeline_mode = #tpu.pipeline_mode<synchronous>, transform_indices = @transform_9, window_bounds = array<i64: 192, 288>}, {pipeline_mode = #tpu.pipeline_mode<synchronous>, transform_indices = @transform_10, window_bounds = array<i64: 1, 288>}, {transform_indices = @transform_11, window_bounds = array<i64: 24, 48>}, {transform_indices = @transform_12, window_bounds = array<i64: 24, 16>}, {transform_indices = @transform_13, window_bounds = array<i64: 24, 48>}, {transform_indices = @transform_14, window_bounds = array<i64: 24, 288>}]} {
    %c0 = arith.constant 0 : index
    %c0_0 = arith.constant 0 : index
    %0 = vector.load %arg1[%c0, %c0_0] : memref<24x32xf32, #tpu.memory_space<vmem>>, vector<24x32xf32>
    %c0_1 = arith.constant 0 : index
    %c0_2 = arith.constant 0 : index
    %1 = vector.load %arg2[%c0_1, %c0_2] : memref<32x64xf32, #tpu.memory_space<vmem>>, vector<32x64xf32>
    %cst = arith.constant dense<0.000000e+00> : vector<24x64xf32>
    %2 = tpu.matmul %0, %1, %cst {dimension_numbers = #tpu.dot_dimension_numbers<[1], [0], [0], [1], [0, 0, 1, 1], [], []>} : vector<24x32xf32>, vector<32x64xf32>, vector<24x64xf32> -> vector<24x64xf32>
    %c0_3 = arith.constant 0 : index
    %c0_4 = arith.constant 0 : index
    %3 = vector.load %arg3[%c0_3, %c0_4] : memref<1x64xf32, #tpu.memory_space<vmem>>, vector<1x64xf32>
    %4 = vector.broadcast %3 : vector<1x64xf32> to vector<24x64xf32>
    %5 = arith.addf %2, %4 : vector<24x64xf32>
    %cst_5 = arith.constant 0.000000e+00 : f32
    %6 = vector.broadcast %cst_5 : f32 to vector<24x64xf32>
    %7 = arith.cmpf ogt, %5, %6 : vector<24x64xf32>
    %cst_6 = arith.constant 0.000000e+00 : f32
    %8 = vector.broadcast %cst_6 : f32 to vector<24x64xf32>
    %9 = arith.minimumf %5, %8 : vector<24x64xf32>
    %10 = math.exp %9 : vector<24x64xf32>
    %cst_7 = arith.constant 1.000000e+00 : f32
    %11 = vector.broadcast %cst_7 : f32 to vector<24x64xf32>
    %12 = arith.subf %10, %11 : vector<24x64xf32>
    %13 = arith.select %7, %5, %12 : vector<24x64xi1>, vector<24x64xf32>
    %c0_8 = arith.constant 0 : index
    %c0_9 = arith.constant 0 : index
    %14 = vector.load %arg4[%c0_8, %c0_9] : memref<64x32xf32, #tpu.memory_space<vmem>>, vector<64x32xf32>
    %cst_10 = arith.constant dense<0.000000e+00> : vector<24x32xf32>
    %15 = tpu.matmul %13, %14, %cst_10 {dimension_numbers = #tpu.dot_dimension_numbers<[1], [0], [0], [1], [0, 0, 1, 1], [], []>} : vector<24x64xf32>, vector<64x32xf32>, vector<24x32xf32> -> vector<24x32xf32>
    %c0_11 = arith.constant 0 : index
    %c0_12 = arith.constant 0 : index
    %16 = vector.load %arg5[%c0_11, %c0_12] : memref<1x32xf32, #tpu.memory_space<vmem>>, vector<1x32xf32>
    %17 = vector.broadcast %16 : vector<1x32xf32> to vector<24x32xf32>
    %18 = arith.addf %15, %17 : vector<24x32xf32>
    %cst_13 = arith.constant 0.000000e+00 : f32
    %19 = vector.broadcast %cst_13 : f32 to vector<24x32xf32>
    %20 = arith.cmpf ogt, %18, %19 : vector<24x32xf32>
    %cst_14 = arith.constant 0.000000e+00 : f32
    %21 = vector.broadcast %cst_14 : f32 to vector<24x32xf32>
    %22 = arith.minimumf %18, %21 : vector<24x32xf32>
    %23 = math.exp %22 : vector<24x32xf32>
    %cst_15 = arith.constant 1.000000e+00 : f32
    %24 = vector.broadcast %cst_15 : f32 to vector<24x32xf32>
    %25 = arith.subf %23, %24 : vector<24x32xf32>
    %26 = arith.select %20, %18, %25 : vector<24x32xi1>, vector<24x32xf32>
    %c0_16 = arith.constant 0 : index
    %c0_17 = arith.constant 0 : index
    %27 = vector.load %arg6[%c0_16, %c0_17] : memref<32x96xf32, #tpu.memory_space<vmem>>, vector<32x96xf32>
    %cst_18 = arith.constant dense<0.000000e+00> : vector<24x96xf32>
    %28 = tpu.matmul %26, %27, %cst_18 {dimension_numbers = #tpu.dot_dimension_numbers<[1], [0], [0], [1], [0, 0, 1, 1], [], []>} : vector<24x32xf32>, vector<32x96xf32>, vector<24x96xf32> -> vector<24x96xf32>
    %c0_19 = arith.constant 0 : index
    %c0_20 = arith.constant 0 : index
    %29 = vector.load %arg7[%c0_19, %c0_20] : memref<1x96xf32, #tpu.memory_space<vmem>>, vector<1x96xf32>
    %30 = vector.broadcast %29 : vector<1x96xf32> to vector<24x96xf32>
    %31 = arith.addf %28, %30 : vector<24x96xf32>
    %32 = vector.extract_strided_slice %31 {offsets = [0, 0], sizes = [24, 48], strides = [1, 1]} : vector<24x96xf32> to vector<24x48xf32>
    %33 = vector.extract_strided_slice %31 {offsets = [0, 48], sizes = [24, 48], strides = [1, 1]} : vector<24x96xf32> to vector<24x48xf32>
    %cst_21 = arith.constant -18.420681 : f32
    %cst_22 = arith.constant 18.420681 : f32
    %34 = vector.broadcast %cst_21 : f32 to vector<24x48xf32>
    %35 = arith.maximumf %34, %33 : vector<24x48xf32>
    %36 = vector.broadcast %cst_22 : f32 to vector<24x48xf32>
    %37 = arith.minimumf %36, %35 : vector<24x48xf32>
    %38 = vector.extract_strided_slice %32 {offsets = [0, 0], sizes = [24, 8], strides = [1, 1]} : vector<24x48xf32> to vector<24x8xf32>
    %39 = vector.extract_strided_slice %37 {offsets = [0, 0], sizes = [24, 8], strides = [1, 1]} : vector<24x48xf32> to vector<24x8xf32>
    %40 = tpu.concatenate %38, %39 in 1 : vector<24x8xf32>, vector<24x8xf32> -> vector<24x16xf32>
    %c0_23 = arith.constant 0 : index
    %c0_24 = arith.constant 0 : index
    %41 = vector.load %arg13[%c0_23, %c0_24] : memref<24x16xf32, #tpu.memory_space<vmem>>, vector<24x16xf32>
    tpu.vector_store %arg13[%c0_23, %c0_24], %40 {strides = array<i32>} : memref<24x16xf32, #tpu.memory_space<vmem>>, vector<24x16xf32>,
    %42 = math.exp %37 : vector<24x48xf32>
    %c0_25 = arith.constant 0 : index
    %c0_26 = arith.constant 0 : index
    %43 = vector.load %arg12[%c0_25, %c0_26] : memref<24x48xf32, #tpu.memory_space<vmem>>, vector<24x48xf32>
    %44 = arith.mulf %42, %43 : vector<24x48xf32>
    %45 = arith.addf %32, %44 : vector<24x48xf32>
    %c0_27 = arith.constant 0 : index
    %c0_28 = arith.constant 0 : index
    %46 = vector.load %arg14[%c0_27, %c0_28] : memref<24x48xf32, #tpu.memory_space<vmem>>, vector<24x48xf32>
    tpu.vector_store %arg14[%c0_27, %c0_28], %45 {strides = array<i32>} : memref<24x48xf32, #tpu.memory_space<vmem>>, vector<24x48xf32>,
    %c0_29 = arith.constant 0 : index
    %c0_30 = arith.constant 0 : index
    %47 = vector.load %arg8[%c0_29, %c0_30] : memref<48x192xf32, #tpu.memory_space<vmem>>, vector<48x192xf32>
    %cst_31 = arith.constant dense<0.000000e+00> : vector<24x192xf32>
    %48 = tpu.matmul %45, %47, %cst_31 {dimension_numbers = #tpu.dot_dimension_numbers<[1], [0], [0], [1], [0, 0, 1, 1], [], []>} : vector<24x48xf32>, vector<48x192xf32>, vector<24x192xf32> -> vector<24x192xf32>
    %c0_32 = arith.constant 0 : index
    %c0_33 = arith.constant 0 : index
    %49 = vector.load %arg9[%c0_32, %c0_33] : memref<1x192xf32, #tpu.memory_space<vmem>>, vector<1x192xf32>
    %50 = vector.broadcast %49 : vector<1x192xf32> to vector<24x192xf32>
    %51 = arith.addf %48, %50 : vector<24x192xf32>
    %52 = arith.negf %51 : vector<24x192xf32>
    %53 = math.exp %52 : vector<24x192xf32>
    %cst_34 = arith.constant 1.000000e+00 : f32
    %54 = vector.broadcast %cst_34 : f32 to vector<24x192xf32>
    %55 = arith.addf %54, %53 : vector<24x192xf32>
    %56 = arith.divf %54, %55 : vector<24x192xf32>
    %c0_35 = arith.constant 0 : index
    %c0_36 = arith.constant 0 : index
    %57 = vector.load %arg10[%c0_35, %c0_36] : memref<192x288xf32, #tpu.memory_space<vmem>>, vector<192x288xf32>
    %cst_37 = arith.constant dense<0.000000e+00> : vector<24x288xf32>
    %58 = tpu.matmul %56, %57, %cst_37 {dimension_numbers = #tpu.dot_dimension_numbers<[1], [0], [0], [1], [0, 0, 1, 1], [], []>} : vector<24x192xf32>, vector<192x288xf32>, vector<24x288xf32> -> vector<24x288xf32>
    %c0_38 = arith.constant 0 : index
    %c0_39 = arith.constant 0 : index
    %59 = vector.load %arg11[%c0_38, %c0_39] : memref<1x288xf32, #tpu.memory_space<vmem>>, vector<1x288xf32>
    %60 = vector.broadcast %59 : vector<1x288xf32> to vector<24x288xf32>
    %61 = arith.addf %58, %60 : vector<24x288xf32>
    %cst_40 = arith.constant 9.99999993E-9 : f32
    %cst_41 = arith.constant 1.000000e+00 : f32
    %62 = vector.broadcast %cst_40 : f32 to vector<24x288xf32>
    %63 = arith.maximumf %62, %61 : vector<24x288xf32>
    %64 = vector.broadcast %cst_41 : f32 to vector<24x288xf32>
    %65 = arith.minimumf %64, %63 : vector<24x288xf32>
    %c0_42 = arith.constant 0 : index
    %c0_43 = arith.constant 0 : index
    %66 = vector.load %arg15[%c0_42, %c0_43] : memref<24x288xf32, #tpu.memory_space<vmem>>, vector<24x288xf32>
    tpu.vector_store %arg15[%c0_42, %c0_43], %65 {strides = array<i32>} : memref<24x288xf32, #tpu.memory_space<vmem>>, vector<24x288xf32>,
    return
  }
  func.func @transform_0(%arg0: i32) -> (i32, i32) {
    %c0_i32 = arith.constant 0 : i32
    %c0_i32_0 = arith.constant 0 : i32
    return %arg0, %c0_i32 : i32, i32
  }
  func.func @transform_1(%arg0: i32) -> (i32, i32) {
    %c0_i32 = arith.constant 0 : i32
    %c0_i32_0 = arith.constant 0 : i32
    %c0_i32_1 = arith.constant 0 : i32
    return %c0_i32, %c0_i32_0 : i32, i32
  }
  func.func @transform_2(%arg0: i32) -> (i32, i32) {
    %c0_i32 = arith.constant 0 : i32
    %c0_i32_0 = arith.constant 0 : i32
    %c0_i32_1 = arith.constant 0 : i32
    return %c0_i32, %c0_i32_0 : i32, i32
  }
  func.func @transform_3(%arg0: i32) -> (i32, i32) {
    %c0_i32 = arith.constant 0 : i32
    %c0_i32_0 = arith.constant 0 : i32
    %c0_i32_1 = arith.constant 0 : i32
    return %c0_i32, %c0_i32_0 : i32, i32
  }
  func.func @transform_4(%arg0: i32) -> (i32, i32) {
    %c0_i32 = arith.constant 0 : i32
    %c0_i32_0 = arith.constant 0 : i32
    %c0_i32_1 = arith.constant 0 : i32
    return %c0_i32, %c0_i32_0 : i32, i32
  }
  func.func @transform_5(%arg0: i32) -> (i32, i32) {
    %c0_i32 = arith.constant 0 : i32
    %c0_i32_0 = arith.constant 0 : i32
    %c0_i32_1 = arith.constant 0 : i32
    return %c0_i32, %c0_i32_0 : i32, i32
  }
  func.func @transform_6(%arg0: i32) -> (i32, i32) {
    %c0_i32 = arith.constant 0 : i32
    %c0_i32_0 = arith.constant 0 : i32
    %c0_i32_1 = arith.constant 0 : i32
    return %c0_i32, %c0_i32_0 : i32, i32
  }
  func.func @transform_7(%arg0: i32) -> (i32, i32) {
    %c0_i32 = arith.constant 0 : i32
    %c0_i32_0 = arith.constant 0 : i32
    %c0_i32_1 = arith.constant 0 : i32
    return %c0_i32, %c0_i32_0 : i32, i32
  }
  func.func @transform_8(%arg0: i32) -> (i32, i32) {
    %c0_i32 = arith.constant 0 : i32
    %c0_i32_0 = arith.constant 0 : i32
    %c0_i32_1 = arith.constant 0 : i32
    return %c0_i32, %c0_i32_0 : i32, i32
  }
  func.func @transform_9(%arg0: i32) -> (i32, i32) {
    %c0_i32 = arith.constant 0 : i32
    %c0_i32_0 = arith.constant 0 : i32
    %c0_i32_1 = arith.constant 0 : i32
    return %c0_i32, %c0_i32_0 : i32, i32
  }
  func.func @transform_10(%arg0: i32) -> (i32, i32) {
    %c0_i32 = arith.constant 0 : i32
    %c0_i32_0 = arith.constant 0 : i32
    %c0_i32_1 = arith.constant 0 : i32
    return %c0_i32, %c0_i32_0 : i32, i32
  }
  func.func @transform_11(%arg0: i32) -> (i32, i32) {
    %c0_i32 = arith.constant 0 : i32
    %c0_i32_0 = arith.constant 0 : i32
    return %arg0, %c0_i32 : i32, i32
  }
  func.func @transform_12(%arg0: i32) -> (i32, i32) {
    %c0_i32 = arith.constant 0 : i32
    %c0_i32_0 = arith.constant 0 : i32
    return %arg0, %c0_i32 : i32, i32
  }
  func.func @transform_13(%arg0: i32) -> (i32, i32) {
    %c0_i32 = arith.constant 0 : i32
    %c0_i32_0 = arith.constant 0 : i32
    return %arg0, %c0_i32 : i32, i32
  }
  func.func @transform_14(%arg0: i32) -> (i32, i32) {
    %c0_i32 = arith.constant 0 : i32
    %c0_i32_0 = arith.constant 0 : i32
    return %arg0, %c0_i32 : i32, i32
  }
}

</mosaic_0001>

<bundles_post_ra>
// kernel: tpu_custom_call.1
= control target key start
LH: loop header
LB: loop body
LE: loop exit
PB: predicated region body
PF: predicated region fallthrough
CT: control target
= control target key end

     0   :  { %20 = vsyncpa [#allocation3], 0  ;;  %s1671_s0 = inlined_call_operand.hbm [shape: f32[24,32], index: 0, kind: input, shape index: {}]   ;;  %s1672_s1 = inlined_call_operand.hbm [shape: f32[32,64], index: 1, kind: input, shape index: {}]   ;;  %s1673_s2 = inlined_call_operand.vmem [shape: f32[1,64], index: 2, kind: input, shape index: {}]   ;;  %s1674_s3 = inlined_call_operand.vmem [shape: f32[64,32], index: 3, kind: input, shape index: {}]   ;;  %s1675_s4 = inlined_call_operand.vmem [shape: f32[1,32], index: 4, kind: input, shape index: {}]   ;;  %s1676_s5 = inlined_call_operand.hbm [shape: f32[32,96], index: 5, kind: input, shape index: {}]   ;;  %s1677_s6 = inlined_call_operand.vmem [shape: f32[1,96], index: 6, kind: input, shape index: {}]   ;;  %s1678_s7 = inlined_call_operand.vmem [shape: f32[48,192], index: 7, kind: input, shape index: {}]   ;;  %s1679_s8 = inlined_call_operand.vmem [shape: f32[1,192], index: 8, kind: input, shape index: {}]   ;;  %s1680_s9 = inlined_call_operand.hbm [shape: f32[192,288], index: 9, kind: input, shape index: {}]   ;;  %s1681_s10 = inlined_call_operand.vmem [shape: f32[1,288], index: 10, kind: input, shape index: {}]   ;;  %s1682_s11 = inlined_call_operand.hbm [shape: f32[24,48], index: 11, kind: input, shape index: {}]   ;;  %s1683_s12 = inlined_call_operand.vmem [shape: f32[24,16], index: 12, kind: output, shape index: {0}]   ;;  %s1684_s13 = inlined_call_operand.hbm [shape: f32[24,48], index: 13, kind: output, shape index: {1}]   ;;  %s1685_s14 = inlined_call_operand.hbm [shape: f32[24,288], index: 14, kind: output, shape index: {2}]  }
   0x1   :  { %21 = vsyncpa [#allocation6], 0 }
   0x2   :  { %22 = vsyncpa [#allocation9], 0 }
   0x3   :  { %23 = vsyncpa [#allocation4], 0 }
   0x4   :  { %24 = vsyncpa [#allocation13], 0  ;;  %s1335_s29 = smov [#allocation5]   ;;  %s1336_s15 = smov [#allocation8]  }
   0x5   :  { %s42_s30 = sshll.u32 %s1335_s29, 4  ;;  %s78_s16 = sshll.u32 %s1336_s15, 4  ;;  %s43_s30 = int_to_ptr.vmem [resolvable:$true] %s42_s30  ;;  %s79_s16 = int_to_ptr.vmem [resolvable:$true] %s78_s16 }
   0x6   :  { %s1193_s17 = scalar_lea.vmem %s43_s30, 512  ;;  %p1198_p1 = scmp.lt.s32.totalorder %s43_s30, %s43_s30 }
   0x7   :  { %p1194_p0 = scmp.ne.s32.totalorder %s43_s30, %s1193_s17  ;;  %p1199_p2 = scmp.lt.s32.totalorder %s1193_s17, %s1193_s17 }
   0x9   :  { %p1200_p3 = por %p1199_p2, %p1198_p1 }
   0xb   :  { %p1201_p4 = pnand %p1200_p3, %p1194_p0 }
   0xd   :  { %1204 = shalt.err (!%p1201_p4)
}
   0xe   :  { %s1337_s18 = smov 128   ;;  %s1338_s19 = smov 8  }
   0xf   :  { %48 = dma.hbm_to_vmem [thread:$0]  %s1672_s1, 512, %s43_s30, [#allocation6], %s1337_s18, %s1337_s18, %s1338_s19  }
  0x10   :  { %s1213_s22 = scalar_lea.vmem %s79_s16, 9216  ;;  %p1218_p6 = scmp.lt.s32.totalorder %s79_s16, %s79_s16 }
  0x11   :  { %p1214_p5 = scmp.ne.s32.totalorder %s79_s16, %s1213_s22  ;;  %p1219_p7 = scmp.lt.s32.totalorder %s1213_s22, %s1213_s22 }
  0x13   :  { %p1220_p8 = por %p1219_p7, %p1218_p6 }
  0x15   :  { %p1221_p9 = pnand %p1220_p8, %p1214_p5 }
  0x17   :  { %1224 = shalt.err (!%p1221_p9)
}
  0x18   :  { %s1339_s23 = smov 384   ;;  %s1340_s24 = smov 24  }
  0x19   :  { %84 = dma.hbm_to_vmem [thread:$0]  %s1680_s9, 9216, %s79_s16, [#allocation9], %s1339_s23, %s1339_s23, %s1340_s24  }
  0x1a   :  { %s1341_s27 = smov [#allocation2]   ;;  %s1342_s29 = smov [#allocation7]  }
  0x1b   :  { %s30_s28 = sshll.u32 %s1341_s27, 4  ;;  %s60_s1 = sshll.u32 %s1342_s29, 4  ;;  %s31_s28 = int_to_ptr.vmem [resolvable:$true] %s30_s28  ;;  %s61_s1 = int_to_ptr.vmem [resolvable:$true] %s60_s1 }
  0x1c   :  { %s1233_s30 = scalar_lea.vmem %s31_s28, 384  ;;  %p1238_p11 = scmp.lt.s32.totalorder %s31_s28, %s31_s28 }
  0x1d   :  { %p1234_p10 = scmp.ne.s32.totalorder %s31_s28, %s1233_s30  ;;  %p1239_p12 = scmp.lt.s32.totalorder %s1233_s30, %s1233_s30 }
  0x1f   :  { %p1240_p13 = por %p1239_p12, %p1238_p11 }
  0x21   :  { %p1241_p0 = pnand %p1240_p13, %p1234_p10 }
  0x23   :  { %1244 = shalt.err (!%p1241_p0)
}
  0x24   :  { %36 = dma.hbm_to_vmem [thread:$0]  %s1671_s0, 384, %s31_s28, [#allocation3], %s1337_s18, %s1337_s18, %s1338_s19  }
  0x25   :  { %s1253_s9 = scalar_lea.vmem %s61_s1, 512  ;;  %p1258_p2 = scmp.lt.s32.totalorder %s61_s1, %s61_s1 }
  0x26   :  { %p1254_p1 = scmp.ne.s32.totalorder %s61_s1, %s1253_s9  ;;  %p1259_p3 = scmp.lt.s32.totalorder %s1253_s9, %s1253_s9 }
  0x28   :  { %p1260_p4 = por %p1259_p3, %p1258_p2 }
  0x2a   :  { %p1261_p5 = pnand %p1260_p4, %p1254_p1 }
  0x2c   :  { %1264 = shalt.err (!%p1261_p5)
}
  0x2d   :  { %66 = dma.hbm_to_vmem [thread:$0]  %s1676_s5, 512, %s61_s1, [#allocation6], %s1337_s18, %s1337_s18, %s1338_s19  }
  0x2e   :  { %s1343_s21 = smov [#allocation10]  }
  0x2f   :  { %s92_s22 = sshll.u32 %s1343_s21, 4  ;;  %s93_s22 = int_to_ptr.vmem [resolvable:$true] %s92_s22 }
  0x30   :  { %s1273_s25 = scalar_lea.vmem %s93_s22, 384  ;;  %p1278_p7 = scmp.lt.s32.totalorder %s93_s22, %s93_s22 }
  0x31   :  { %p1274_p6 = scmp.ne.s32.totalorder %s93_s22, %s1273_s25  ;;  %p1279_p8 = scmp.lt.s32.totalorder %s1273_s25, %s1273_s25 }
  0x33   :  { %p1280_p9 = por %p1279_p8, %p1278_p7 }
  0x35   :  { %p1281_p10 = pnand %p1280_p9, %p1274_p6 }
  0x37   :  { %1284 = shalt.err (!%p1281_p10)
}
  0x38   :  { %98 = dma.hbm_to_vmem [thread:$0]  %s1682_s11, 384, %s93_s22, [#allocation9], %s1337_s18, %s1337_s18, %s1338_s19  }
  0x39   :  { %1325 = dma.done.wait [#allocation3], 384  }
  0x3a   :  { %1326 = vsyncadd [#allocation3], 4294966912 }
  0x3b   :  { %1327 = dma.done.wait [#allocation6], 1024  }
  0x3c   :  { %1328 = vsyncadd [#allocation6], 4294966272 }
  0x3d   :  { %1329 = dma.done.wait [#allocation9], 9600  }
  0x3e   :  { %1330 = vsyncadd [#allocation9], 4294957696  ;;  %v1344_v0 = vmov 0.0   ;;  %vm1345_vm0 = vmmov 0   ;;  %v120_v1 = vld [vmem:[#allocation5 + $0x18] sm:$0xff]  ;;  %v119_v2 = vld [vmem:[#allocation5 + $0x10] sm:$0xff] }
  0x3f   :  { %1068 = vmatprep.subr.mxu0 %v1344_v0  ;;  %1076 = vmatprep.mubr.msk.f32.mxu0 %vm1345_vm0, %v1344_v0  ;;  %v118_v3 = vld [vmem:[#allocation5 + $0x8] sm:$0xff]  ;;  %v117_v4 = vld [vmem:[#allocation5] sm:$0xff]  ;;  %vm128_vm1 = vcmask 261120   ;;  %v115_v6 = vld [vmem:[#allocation2 + $0x8] sm:$0xff]  ;;  %vm251_vm2 = vcmask 523264   ;;  %s1347_s30 = smov 80  }
  0x40   :  { %1085 = vmatprep.subr.mxu1 %v1344_v0  ;;  %1101 = vmatprep.mubr.msk.f32.mxu1 %vm1345_vm0, %v1344_v0  ;;  %v114_v5 = vld [vmem:[#allocation2] sm:$0xff]  ;;  %v116_v7 = vld [vmem:[#allocation2 + $0x10] sm:$0xff]  ;;  %v243_v8 = vld [vmem:[%s1674_s3 + $0x38] sm:$0xff]  ;;  %vm524_vm9 = vcmask 392192   ;;  %vm477_vm10 = vcmask 64512   ;;  %vm481_vm11 = vcmask 130048  }
  0x41   :  { %1069 = vmatpush3.msra.mxu0 %v120_v1  ;;  %1086 = vmatpush3.msra.mxu1 %v243_v8  ;;  %v242_v9 = vld [vmem:[%s1674_s3 + $0x30] sm:$0xff]  ;;  %v241_v10 = vld [vmem:[%s1674_s3 + $0x28] sm:$0xff]  ;;  %v240_v11 = vld [vmem:[%s1674_s3 + $0x20] sm:$0xff] }
  0x42   :  { %1070 = vmatprep.subr.mxu0 %v1344_v0  ;;  %1087 = vmatprep.subr.mxu1 %v1344_v0  ;;  %v239_v12 = vld [vmem:[%s1674_s3 + $0x18] sm:$0xff]  ;;  %v238_v13 = vld [vmem:[%s1674_s3 + $0x10] sm:$0xff]  ;;  %v237_v14 = vld [vmem:[%s1674_s3 + $0x8] sm:$0xff] }
  0x43   :  { %1071 = vmatpush3.msra.mxu0 %v119_v2  ;;  %1088 = vmatpush3.msra.mxu1 %v242_v9  ;;  %v236_v15 = vld [vmem:[%s1674_s3] sm:$0xff]  ;;  %v362_v41 = vld [vmem:[#allocation7 + $0x18] sm:$0xff]  ;;  %v361_v42 = vld [vmem:[#allocation7 + $0x10] sm:$0xff] }
  0x44   :  { %1072 = vmatprep.subr.mxu0 %v1344_v0  ;;  %1089 = vmatprep.subr.mxu1 %v1344_v0  ;;  %v1007_v16 = vld [vmem:[%s1673_s2] ss:$0 sm:$0xff]  ;;  %v359_v44 = vld [vmem:[#allocation7] sm:$0xff]  ;;  %v493_v46 = vld [vmem:[#allocation10 + $0x10] sm:$0xff]  ;;  %s1346_s2 = smov 48  }
  0x45   :  { %1073 = vmatpush3.msra.mxu0 %v118_v3  ;;  %1090 = vmatpush3.msra.mxu1 %v241_v10  ;;  %v360_v43 = vld [vmem:[#allocation7 + $0x8] sm:$0xff]  ;;  %v491_v45 = vld [vmem:[#allocation10] sm:$0xff] }
  0x46   :  { %1074 = vmatprep.subr.mxu0 %v1344_v0  ;;  %1091 = vmatprep.subr.mxu1 %v1344_v0  ;;  %v492_v47 = vld [vmem:[#allocation10 + $0x8] sm:$0xff]  ;;  %v539_v10 = vld [vmem:[%s1678_s7 + $0x58] sm:$0xff] }
  0x47   :  { %1075 = vmatpush3.msra.mxu0 %v117_v4  ;;  %1092 = vmatpush3.msra.mxu1 %v240_v11  ;;  %v1014_v48 = vld [vmem:[%s1675_s4] ss:$0 sm:$0xff]  ;;  %v538_v11 = vld [vmem:[%s1678_s7 + $0x50] sm:$0xff] }
  0x48   :  { %1077 = vmatmul.mubr.msk.f32.vlgmr.msra.gmra.mxu0 %vm128_vm1, %v114_v5  ;;  %1110 = vmatprep.subr.mxu0 %v1344_v0 }
  0x49   :  { %1079 = vmatprep.mubr.msk.f32.mxu0 %vm1345_vm0, %v1344_v0  ;;  %1093 = vmatprep.subr.mxu1 %v1344_v0 }
  0x4a   :  { %1094 = vmatpush3.msra.mxu1 %v239_v12  ;;  %1111 = vmatpush3.msra.mxu0 %v362_v41  ;;  %v537_v12 = vld [vmem:[%s1678_s7 + $0x48] sm:$0xff] }
  0x4b   :  { %1095 = vmatprep.subr.mxu1 %v1344_v0  ;;  %1112 = vmatprep.subr.mxu0 %v1344_v0 }
  0x4c   :  { %1080 = vmatmul.mubr.msk.f32.gmra.mxu0 %vm128_vm1, %v115_v6  ;;  %1096 = vmatpush3.msra.mxu1 %v238_v13  ;;  %v536_v13 = vld [vmem:[%s1678_s7 + $0x40] sm:$0xff] }
  0x4d   :  { %1082 = vmatprep.mubr.msk.f32.mxu0 %vm1345_vm0, %v1344_v0  ;;  %1097 = vmatprep.subr.mxu1 %v1344_v0 }
  0x4e   :  { %1098 = vmatpush3.msra.mxu1 %v237_v14  ;;  %1113 = vmatpush3.msra.mxu0 %v361_v42  ;;  %v535_v14 = vld [vmem:[%s1678_s7 + $0x38] sm:$0xff]  ;;  %v726_v42 = vld [vmem:[#allocation8 + $0x170] sm:$0xff] }
  0x4f   :  { %1099 = vmatprep.subr.mxu1 %v1344_v0  ;;  %1114 = vmatprep.subr.mxu0 %v1344_v0 }
  0x50   :  { %1083 = vmatmul.mubr.msk.f32.gmra.mxu0 %vm128_vm1, %v116_v7  ;;  %1100 = vmatpush3.msra.mxu1 %v236_v15  ;;  %v534_v15 = vld [vmem:[%s1678_s7 + $0x30] sm:$0xff] }
  0x51   :  { %1118 = vmatprep.mubr.msk.f32.mxu0 %vm1345_vm0, %v1344_v0  ;;  %1115 = vmatpush3.msra.mxu0 %v360_v43  ;;  %v725_v43 = vld [vmem:[#allocation8 + $0x168] sm:$0xff] }
  0x52   :  { %1116 = vmatprep.subr.mxu0 %v1344_v0  ;;  %497 = vrot.lane.b32.xlu0 %v491_v45, %s1346_s2  ;;  %v723_v45 = vld [vmem:[#allocation8 + $0x158] sm:$0xff] }
  0x53   :  { %1117 = vmatpush3.msra.mxu0 %v359_v44  ;;  %501 = vrot.lane.b32.xlu1 %v493_v46, %s1346_s2  ;;  %v722_v46 = vld [vmem:[#allocation8 + $0x150] sm:$0xff] }
  0x54   :  { %581 = vmatprep.subr.mxu1 %v539_v10  ;;  %778 = vmatprep.subr.mxu0 %v726_v42  ;;  %v680_v42 = vld [vmem:[#allocation8] sm:$0xff] }
  0x56   :  { %499 = vrot.lane.b32.xlu0 %v492_v47, %s1346_s2 }
 0x108   :  { %v204_v17 = vpop.f32.mrf.mxu0 }
 0x109   :  { %v205_v18 = vadd.f32 %v1007_v16, %v204_v17  ;;  %v532_v17 = vld [vmem:[%s1678_s7 + $0x20] sm:$0xff] }
 0x10a   :  { %v1078_v19 = vpop.f32.mrf.mxu0 }
 0x10b   :  { %v221_v20 = vmin.f32 %v205_v18, 0.0  ;;  %vm218_vm3 = vcmp.gt.f32.partialorder %v205_v18, 0.0  ;;  %v530_v19 = vld [vmem:[%s1678_s7 + $0x10] sm:$0xff] }
 0x10c   :  { %v209_v21 = vpop.f32.mrf.mxu0 }
 0x10d   :  { %v224_v22 = vmul.f32 1.442695, %v221_v20  ;;  %v210_v23 = vadd.f32 %v1007_v16, %v209_v21  ;;  %v529_v20 = vld [vmem:[%s1678_s7 + $0x8] sm:$0xff]  ;;  %v1021_v21 = vld [vmem:[%s1677_s6] ss:$0 sm:$0xff] }
 0x10e   :  { %v1081_v24 = vpop.f32.mrf.mxu0 }
 0x10f   :  { %1143 = vpow2.f32 %v224_v22  ;;  %v222_v25 = vmin.f32 %v210_v23, 0.0  ;;  %vm219_vm4 = vcmp.gt.f32.partialorder %v210_v23, 0.0 }
 0x110   :  { %v214_v26 = vpop.f32.mrf.mxu0 }
 0x111   :  { %v226_v27 = vmul.f32 1.442695, %v222_v25  ;;  %v215_v28 = vadd.f32 %v1007_v16, %v214_v26  ;;  %v533_v16 = vld [vmem:[%s1678_s7 + $0x28] sm:$0xff] }
 0x112   :  { %v1084_v29 = vpop.f32.mrf.mxu0 }
 0x113   :  { %1145 = vpow2.f32 %v226_v27  ;;  %v223_v30 = vmin.f32 %v215_v28, 0.0  ;;  %vm220_vm5 = vcmp.gt.f32.partialorder %v215_v28, 0.0 }
 0x115   :  { %v228_v31 = vmul.f32 1.442695, %v223_v30 }
 0x117   :  { %1147 = vpow2.f32 %v228_v31 }
 0x11c   :  { %v1144_v32 = vpop.eup %1143 }
 0x11d   :  { %v1011_v33 = vadd.f32 -1.0, %v1144_v32 }
 0x11f   :  { %v233_v34 = vsel %vm218_vm3, %v205_v18, %v1011_v33  ;;  %v531_v18 = vld [vmem:[%s1678_s7 + $0x18] sm:$0xff] }
 0x120   :  { %v1146_v35 = vpop.eup %1145  ;;  %1102 = vmatmul.mubr.msk.f32.vlgmr.msra.gmra.mxu1 %vm251_vm2, %v233_v34 }
 0x121   :  { %1104 = vmatprep.mubr.msk.f32.mxu1 %vm1345_vm0, %v1344_v0  ;;  %v1012_v36 = vadd.f32 -1.0, %v1146_v35  ;;  %582 = vmatpush1.msra.mxu1 %v538_v11  ;;  %v528_v35 = vld [vmem:[%s1678_s7] sm:$0xff]  ;;  %s1348_s7 = smov 88   ;;  %v711_v11 = vld [vmem:[#allocation8 + $0xf8] sm:$0xff] }
 0x122   :  { %583 = vmatprep.subr.mxu1 %v537_v12  ;;  %v710_v12 = vld [vmem:[#allocation8 + $0xf0] sm:$0xff] }
 0x123   :  { %v234_v37 = vsel %vm219_vm4, %v210_v23, %v1012_v36  ;;  %584 = vmatpush1.msra.mxu1 %v536_v13  ;;  %v712_v13 = vld [vmem:[#allocation8 + $0x100] sm:$0xff] }
 0x124   :  { %v1148_v38 = vpop.eup %1147  ;;  %1105 = vmatmul.mubr.msk.f32.gmra.mxu1 %vm251_vm2, %v234_v37  ;;  %585 = vmatprep.subr.mxu1 %v535_v14  ;;  %v708_v14 = vld [vmem:[#allocation8 + $0xe0] sm:$0xff] }
 0x125   :  { %1107 = vmatprep.mubr.msk.f32.mxu1 %vm1345_vm0, %v1344_v0  ;;  %v1013_v39 = vadd.f32 -1.0, %v1148_v38  ;;  %586 = vmatpush1.msra.mxu1 %v534_v15  ;;  %v498_v38 = vpop.permute.xlu0 %497  ;;  %v707_v15 = vld [vmem:[#allocation8 + $0xd8] sm:$0xff] }
 0x126   :  { %587 = vmatprep.subr.mxu1 %v533_v16  ;;  %v709_v16 = vld [vmem:[#allocation8 + $0xe8] sm:$0xff] }
 0x127   :  { %v235_v40 = vsel %vm220_vm5, %v215_v28, %v1013_v39  ;;  %588 = vmatpush1.msra.mxu1 %v532_v17  ;;  %v705_v17 = vld [vmem:[#allocation8 + $0xc8] sm:$0xff] }
 0x128   :  { %1108 = vmatmul.mubr.msk.f32.gmra.mxu1 %vm251_vm2, %v235_v40  ;;  %589 = vmatprep.subr.mxu1 %v531_v18  ;;  %v704_v18 = vld [vmem:[#allocation8 + $0xc0] sm:$0xff] }
 0x129   :  { %625 = vmatprep.mubr.f32.mxu1 %v1344_v0  ;;  %590 = vmatpush1.msra.mxu1 %v530_v19  ;;  %v500_v41 = vpop.permute.xlu0 %499  ;;  %v706_v19 = vld [vmem:[#allocation8 + $0xd0] sm:$0xff] }
 0x12a   :  { %591 = vmatprep.subr.mxu1 %v529_v20  ;;  %v702_v20 = vld [vmem:[#allocation8 + $0xb0] sm:$0xff] }
 0x12b   :  { %592 = vmatpush1.msra.mxu1 %v528_v35  ;;  %v687_v35 = vld [vmem:[#allocation8 + $0x38] sm:$0xff] }
 0x12c   :  { %861 = vmatprep.subr.mxu1 %v1344_v0 }
 0x1e0   :  { %v327_v49 = vpop.f32.mrf.mxu1 }
 0x1e1   :  { %v328_v50 = vadd.f32 %v1014_v48, %v327_v49  ;;  %v502_v49 = vpop.permute.xlu1 %501 }
 0x1e2   :  { %v1103_v51 = vpop.f32.mrf.mxu1 }
 0x1e3   :  { %v344_v52 = vmin.f32 %v328_v50, 0.0  ;;  %vm341_vm6 = vcmp.gt.f32.partialorder %v328_v50, 0.0  ;;  %v717_v51 = vld [vmem:[#allocation8 + $0x128] sm:$0xff] }
 0x1e4   :  { %v332_v53 = vpop.f32.mrf.mxu1 }
 0x1e5   :  { %v347_v54 = vmul.f32 1.442695, %v344_v52  ;;  %v333_v55 = vadd.f32 %v1014_v48, %v332_v53 }
 0x1e6   :  { %v1106_v56 = vpop.f32.mrf.mxu1 }
 0x1e7   :  { %1149 = vpow2.f32 %v347_v54  ;;  %v345_v57 = vmin.f32 %v333_v55, 0.0  ;;  %vm342_vm7 = vcmp.gt.f32.partialorder %v333_v55, 0.0  ;;  %v716_v54 = vld [vmem:[#allocation8 + $0x120] sm:$0xff]  ;;  %v713_v56 = vld [vmem:[#allocation8 + $0x108] sm:$0xff] }
 0x1e8   :  { %v337_v58 = vpop.f32.mrf.mxu1 }
 0x1e9   :  { %v349_v59 = vmul.f32 1.442695, %v345_v57  ;;  %v338_v60 = vadd.f32 %v1014_v48, %v337_v58  ;;  %v720_v48 = vld [vmem:[#allocation8 + $0x140] sm:$0xff] }
 0x1ea   :  { %v1109_v61 = vpop.f32.mrf.mxu1 }
 0x1eb   :  { %1151 = vpow2.f32 %v349_v59  ;;  %v346_v62 = vmin.f32 %v338_v60, 0.0  ;;  %vm343_vm8 = vcmp.gt.f32.partialorder %v338_v60, 0.0  ;;  %v727_v59 = vld [vmem:[#allocation8 + $0x178] sm:$0xff] }
 0x1ed   :  { %v351_v63 = vmul.f32 1.442695, %v346_v62 }
 0x1ef   :  { %1153 = vpow2.f32 %v351_v63  ;;  %v721_v63 = vld [vmem:[#allocation8 + $0x148] sm:$0xff] }
 0x1f4   :  { %v1150_v1 = vpop.eup %1149 }
 0x1f5   :  { %v1018_v2 = vadd.f32 -1.0, %v1150_v1  ;;  %v718_v1 = vld [vmem:[#allocation8 + $0x130] sm:$0xff] }
 0x1f7   :  { %v356_v3 = vsel %vm341_vm6, %v328_v50, %v1018_v2  ;;  %v719_v50 = vld [vmem:[#allocation8 + $0x138] sm:$0xff] }
 0x1f8   :  { %v1152_v4 = vpop.eup %1151  ;;  %1119 = vmatmul.mubr.msk.f32.vlgmr.msra.gmra.mxu0 %vm128_vm1, %v356_v3 }
 0x1f9   :  { %1121 = vmatprep.mubr.msk.f32.mxu0 %vm1345_vm0, %v1344_v0  ;;  %v1019_v5 = vadd.f32 -1.0, %v1152_v4  ;;  %779 = vmatpush1.msra.mxu0 %v725_v43  ;;  %v682_v43 = vld [vmem:[#allocation8 + $0x10] sm:$0xff] }
 0x1fa   :  { %780 = vmatprep.subr.mxu0 %v723_v45  ;;  %v749_v45 = vld [vmem:[#allocation8 + $0x228] sm:$0xff] }
 0x1fb   :  { %v357_v6 = vsel %vm342_vm7, %v333_v55, %v1019_v5  ;;  %781 = vmatpush1.msra.mxu0 %v722_v46  ;;  %v714_v55 = vld [vmem:[#allocation8 + $0x110] sm:$0xff]  ;;  %v751_v46 = vld [vmem:[#allocation8 + $0x238] sm:$0xff] }
 0x1fc   :  { %v1154_v7 = vpop.eup %1153  ;;  %1122 = vmatmul.mubr.msk.f32.gmra.mxu0 %vm128_vm1, %v357_v6  ;;  %782 = vmatprep.subr.mxu0 %v720_v48  ;;  %v715_v6 = vld [vmem:[#allocation8 + $0x118] sm:$0xff]  ;;  %v746_v48 = vld [vmem:[#allocation8 + $0x210] sm:$0xff] }
 0x1fd   :  { %1124 = vmatprep.mubr.msk.f32.mxu0 %vm1345_vm0, %v1344_v0  ;;  %v1020_v8 = vadd.f32 -1.0, %v1154_v7  ;;  %783 = vmatpush1.msra.mxu0 %v719_v50  ;;  %v744_v50 = vld [vmem:[#allocation8 + $0x200] sm:$0xff] }
 0x1fe   :  { %784 = vmatprep.subr.mxu0 %v717_v51  ;;  %v743_v51 = vld [vmem:[#allocation8 + $0x1f8] sm:$0xff] }
 0x1ff   :  { %v358_v9 = vsel %vm343_vm8, %v338_v60, %v1020_v8  ;;  %785 = vmatpush1.msra.mxu0 %v716_v54  ;;  %v724_v60 = vld [vmem:[#allocation8 + $0x160] sm:$0xff] }
 0x200   :  { %1125 = vmatmul.mubr.msk.f32.gmra.mxu0 %vm128_vm1, %v358_v9  ;;  %786 = vmatprep.subr.mxu0 %v714_v55  ;;  %v740_v54 = vld [vmem:[#allocation8 + $0x1e0] sm:$0xff]  ;;  %v742_v55 = vld [vmem:[#allocation8 + $0x1f0] sm:$0xff] }
 0x201   :  { %787 = vmatpush1.msra.mxu0 %v713_v56  ;;  %v738_v56 = vld [vmem:[#allocation8 + $0x1d0] sm:$0xff] }
 0x202   :  { %788 = vmatprep.subr.mxu0 %v711_v11 }
 0x203   :  { %789 = vmatpush1.msra.mxu0 %v710_v12 }
 0x204   :  { %790 = vmatprep.subr.mxu0 %v708_v14 }
 0x205   :  { %791 = vmatpush1.msra.mxu0 %v707_v15 }
 0x206   :  { %792 = vmatprep.subr.mxu0 %v705_v17 }
 0x207   :  { %793 = vmatpush1.msra.mxu0 %v704_v18 }
 0x208   :  { %794 = vmatprep.subr.mxu0 %v702_v20 }
 0x2b8   :  { %v445_v22 = vpop.f32.mrf.mxu0 }
 0x2b9   :  { %v1566_v23 = vadd.f32 %v1021_v21, %v445_v22  ;;  %v703_v22 = vld [vmem:[#allocation8 + $0xb8] sm:$0xff] }
 0x2ba   :  { %v1120_v24 = vpop.f32.mrf.mxu0 }
 0x2bb   :  { %v1025_v25 = vclamps-f32 %v1566_v23, 18.420681  ;;  %v698_v24 = vld [vmem:[#allocation8 + $0x90] sm:$0xff] }
 0x2bc   :  { %v450_v26 = vpop.f32.mrf.mxu0 }
 0x2bd   :  { %v485_v27 = vmul.f32 1.442695, %v1025_v25  ;;  %v1569_v28 = vadd.f32 %v1021_v21, %v450_v26  ;;  %v696_v26 = vld [vmem:[#allocation8 + $0x80] sm:$0xff] }
 0x2be   :  { %v1123_v29 = vpop.f32.mrf.mxu0 }
 0x2bf   :  { %1155 = vpow2.f32 %v485_v27  ;;  %v1026_v30 = vclamps-f32 %v1569_v28, 18.420681  ;;  %v695_v27 = vld [vmem:[#allocation8 + $0x78] sm:$0xff]  ;;  %v693_v29 = vld [vmem:[#allocation8 + $0x68] sm:$0xff] }
 0x2c0   :  { %v455_v31 = vpop.f32.mrf.mxu0 }
 0x2c1   :  { %v487_v32 = vmul.f32 1.442695, %v1026_v30  ;;  %v1572_v33 = vadd.f32 %v1021_v21, %v455_v31  ;;  %v701_v21 = vld [vmem:[#allocation8 + $0xa8] sm:$0xff]  ;;  %v694_v31 = vld [vmem:[#allocation8 + $0x70] sm:$0xff] }
 0x2c2   :  { %v1126_v34 = vpop.f32.mrf.mxu0  ;;  %795 = vmatpush1.msra.mxu0 %v701_v21 }
 0x2c3   :  { %1157 = vpow2.f32 %v487_v32  ;;  %v1027_v36 = vclamps-f32 %v1572_v33, 18.420681  ;;  %v690_v32 = vld [vmem:[#allocation8 + $0x50] sm:$0xff]  ;;  %v691_v34 = vld [vmem:[#allocation8 + $0x58] sm:$0xff] }
 0x2c5   :  { %v489_v37 = vmul.f32 1.442695, %v1027_v36 }
 0x2c7   :  { %1159 = vpow2.f32 %v489_v37  ;;  %v688_v37 = vld [vmem:[#allocation8 + $0x40] sm:$0xff] }
 0x2cc   :  { %v1156_v39 = vpop.eup %1155 }
 0x2cd   :  { %v506_v40 = vmul.f32 %v1156_v39, %v498_v38  ;;  %v684_v38 = vld [vmem:[#allocation8 + $0x20] sm:$0xff]  ;;  %v683_v39 = vld [vmem:[#allocation8 + $0x18] sm:$0xff] }
 0x2cf   :  { %512 = vrot.lane.b32.xlu1 %v506_v40, %s1347_s30  ;;  %v685_v40 = vld [vmem:[#allocation8 + $0x28] sm:$0xff] }
 0x2d0   :  { %v1158_v44 = vpop.eup %1157 }
 0x2d1   :  { %v507_v47 = vmul.f32 %v1158_v44, %v500_v41  ;;  %v681_v41 = vld [vmem:[#allocation8 + $0x8] sm:$0xff]  ;;  %v750_v44 = vld [vmem:[#allocation8 + $0x230] sm:$0xff] }
 0x2d3   :  { %514 = vrot.lane.b32.xlu0 %v507_v47, %s1347_s30  ;;  %v747_v47 = vld [vmem:[#allocation8 + $0x218] sm:$0xff] }
 0x2d4   :  { %v1160_v52 = vpop.eup %1159 }
 0x2d5   :  { %v508_v53 = vmul.f32 %v1160_v52, %v502_v49  ;;  %v748_v49 = vld [vmem:[#allocation8 + $0x220] sm:$0xff]  ;;  %v745_v52 = vld [vmem:[#allocation8 + $0x208] sm:$0xff] }
 0x2d7   :  { %468 = vrot.lane.b32.xlu0 %v1025_v25, %s1348_s7  ;;  %516 = vrot.lane.b32.xlu1 %v508_v53, %s1347_s30  ;;  %v700_v25 = vld [vmem:[#allocation8 + $0xa0] sm:$0xff]  ;;  %v741_v53 = vld [vmem:[#allocation8 + $0x1e8] sm:$0xff] }
 0x2db   :  { %472 = vrot.lane.b32.xlu0 %v1027_v36, %s1348_s7  ;;  %470 = vrot.lane.b32.xlu1 %v1026_v30, %s1348_s7  ;;  %v692_v30 = vld [vmem:[#allocation8 + $0x60] sm:$0xff]  ;;  %v686_v36 = vld [vmem:[#allocation8 + $0x30] sm:$0xff] }
 0x341   :  { %v513_v57 = vpop.permute.xlu1 %512 }
 0x342   :  { %v521_v58 = vadd.f32 %v513_v57, %v1566_v23  ;;  %v737_v57 = vld [vmem:[#allocation8 + $0x1c8] sm:$0xff] }
 0x344   :  { %525 = vst.msk [vmem:[#allocation11] sm:$0xff] %vm524_vm9, %v521_v58  ;;  %1028 = vmatmul.mubr.msk.f32.vlgmr.msra.gmra.mxu1 %vm524_vm9, %v521_v58  ;;  %v739_v58 = vld [vmem:[#allocation8 + $0x1d8] sm:$0xff] }
 0x345   :  { %v515_v61 = vpop.permute.xlu0 %514  ;;  %631 = vmatprep.mubr.f32.mxu1 %v1344_v0  ;;  %862 = vmatpush1.msra.mxu1 %v727_v59  ;;  %v735_v59 = vld [vmem:[#allocation8 + $0x1b8] sm:$0xff] }
 0x346   :  { %v522_v62 = vadd.f32 %v515_v61, %v1569_v28  ;;  %863 = vmatprep.subr.mxu1 %v1344_v0  ;;  %v736_v61 = vld [vmem:[#allocation8 + $0x1c0] sm:$0xff] }
 0x347   :  { %864 = vmatpush1.msra.mxu1 %v724_v60  ;;  %v734_v60 = vld [vmem:[#allocation8 + $0x1b0] sm:$0xff] }
 0x348   :  { %526 = vst.msk [vmem:[#allocation11 + $0x8] sm:$0xff] %vm524_vm9, %v522_v62  ;;  %1029 = vmatmul.mubr.msk.f32.gmra.mxu1 %vm524_vm9, %v522_v62  ;;  %865 = vmatprep.subr.mxu1 %v1344_v0  ;;  %v732_v62 = vld [vmem:[#allocation8 + $0x1a0] sm:$0xff] }
 0x349   :  { %v469_v2 = vpop.permute.xlu0 %468  ;;  %v517_v3 = vpop.permute.xlu1 %516  ;;  %637 = vmatprep.mubr.f32.mxu1 %v1344_v0  ;;  %866 = vmatpush1.msra.mxu1 %v721_v63  ;;  %v731_v63 = vld [vmem:[#allocation8 + $0x198] sm:$0xff] }
 0x34a   :  { %v478_v4 = vsel %vm477_vm10, %v1566_v23, %v469_v2  ;;  %v523_v5 = vadd.f32 %v517_v3, %v1572_v33  ;;  %867 = vmatprep.subr.mxu1 %v1344_v0  ;;  %v699_v23 = vld [vmem:[#allocation8 + $0x98] sm:$0xff]  ;;  %v729_v2 = vld [vmem:[#allocation8 + $0x188] sm:$0xff]  ;;  %v728_v3 = vld [vmem:[#allocation8 + $0x180] sm:$0xff] }
 0x34b   :  { %482 = vst.msk [vmem:[%s1683_s12] sm:$0xff] %vm481_vm11, %v478_v4  ;;  %868 = vmatpush1.msra.mxu1 %v718_v1  ;;  %796 = vmatprep.subr.mxu0 %v699_v23  ;;  %v733_v1 = vld [vmem:[#allocation8 + $0x1a8] sm:$0xff]  ;;  %v730_v4 = vld [vmem:[#allocation8 + $0x190] sm:$0xff] }
 0x34c   :  { %527 = vst.msk [vmem:[#allocation11 + $0x10] sm:$0xff] %vm524_vm9, %v523_v5  ;;  %1030 = vmatmul.mubr.msk.f32.gmra.mxu1 %vm524_vm9, %v523_v5  ;;  %869 = vmatprep.subr.mxu1 %v1344_v0  ;;  %v542_v5 = vlaneseq }
 0x34d   :  { %v473_v7 = vpop.permute.xlu0 %472  ;;  %v471_v8 = vpop.permute.xlu1 %470  ;;  %870 = vmatpush1.msra.mxu1 %v715_v6  ;;  %797 = vmatpush1.msra.mxu0 %v698_v24 }
 0x34e   :  { %v480_v9 = vsel %vm477_vm10, %v1572_v33, %v473_v7  ;;  %v479_v10 = vsel %vm477_vm10, %v1569_v28, %v471_v8  ;;  %871 = vmatprep.subr.mxu1 %v1344_v0  ;;  %798 = vmatprep.subr.mxu0 %v696_v26  ;;  %v697_v28 = vld [vmem:[#allocation8 + $0x88] sm:$0xff]  ;;  %v1631_v6 = vshrl.u32 %v542_v5, 7 }
 0x34f   :  { %484 = vst.msk [vmem:[%s1683_s12 + $0x10] sm:$0xff] %vm481_vm11, %v480_v9  ;;  %483 = vst.msk [vmem:[%s1683_s12 + $0x8] sm:$0xff] %vm481_vm11, %v479_v10  ;;  %872 = vmatpush1.msra.mxu1 %v712_v13  ;;  %799 = vmatpush1.msra.mxu0 %v695_v27  ;;  %v689_v33 = vld [vmem:[#allocation8 + $0x48] sm:$0xff] }
 0x350   :  { %873 = vmatprep.subr.mxu1 %v1344_v0  ;;  %800 = vmatprep.subr.mxu0 %v693_v29  ;;  %v544_v7 = vsub.s32 0, %v1631_v6  ;;  %v540_v8 = vld [vmem:[%s1679_s8] sm:$0x3]  ;;  %v548_v9 = vsub.s32 1, %v1631_v6  ;;  %s1349_s8 = smov [#allocation11]  }
 0x351   :  { %874 = vmatpush1.msra.mxu1 %v709_v16  ;;  %801 = vmatpush1.msra.mxu0 %v692_v30  ;;  %s975_s25 = sshll.u32 %s1349_s8, 4  ;;  %s976_s25 = int_to_ptr.vmem [resolvable:$true] %s975_s25 }
 0x352   :  { %875 = vmatprep.subr.mxu1 %v1344_v0  ;;  %802 = vmatprep.subr.mxu0 %v690_v32  ;;  %v545_v10 = vrot.slane %v540_v8, %v544_v7  ;;  %s1285_s0 = scalar_lea.vmem %s976_s25, 384  ;;  %p1290_p12 = scmp.lt.s32.totalorder %s976_s25, %s976_s25 }
 0x353   :  { %876 = vmatpush1.msra.mxu1 %v706_v19  ;;  %803 = vmatpush1.msra.mxu0 %v689_v33  ;;  %p1286_p11 = scmp.ne.s32.totalorder %s976_s25, %s1285_s0  ;;  %p1291_p13 = scmp.lt.s32.totalorder %s1285_s0, %s1285_s0 }
 0x354   :  { %877 = vmatprep.subr.mxu1 %v1344_v0  ;;  %804 = vmatprep.subr.mxu0 %v687_v35 }
 0x355   :  { %878 = vmatpush1.msra.mxu1 %v703_v22  ;;  %805 = vmatpush1.msra.mxu0 %v686_v36  ;;  %p1292_p0 = por %p1291_p13, %p1290_p12 }
 0x356   :  { %879 = vmatprep.subr.mxu1 %v1344_v0  ;;  %806 = vmatprep.subr.mxu0 %v684_v38 }
 0x357   :  { %880 = vmatpush1.msra.mxu1 %v700_v25  ;;  %807 = vmatpush1.msra.mxu0 %v683_v39  ;;  %p1293_p1 = pnand %p1292_p0, %p1286_p11 }
 0x358   :  { %881 = vmatprep.subr.mxu1 %v1344_v0  ;;  %808 = vmatprep.subr.mxu0 %v681_v41 }
 0x359   :  { %882 = vmatpush1.msra.mxu1 %v697_v28  ;;  %809 = vmatpush1.msra.mxu0 %v680_v42 }
 0x35a   :  { %883 = vmatprep.subr.mxu1 %v1344_v0  ;;  %826 = vmatprep.subr.mxu0 %v750_v44 }
 0x35b   :  { %884 = vmatpush1.msra.mxu1 %v694_v31  ;;  %827 = vmatpush2.msra.mxu0 %v749_v45 }
 0x35c   :  { %885 = vmatprep.subr.mxu1 %v1344_v0  ;;  %828 = vmatprep.subr.mxu0 %v747_v47 }
 0x35d   :  { %886 = vmatpush1.msra.mxu1 %v691_v34  ;;  %829 = vmatpush2.msra.mxu0 %v746_v48 }
 0x35e   :  { %887 = vmatprep.subr.mxu1 %v1344_v0  ;;  %830 = vmatprep.subr.mxu0 %v744_v50 }
 0x35f   :  { %888 = vmatpush1.msra.mxu1 %v688_v37  ;;  %831 = vmatpush2.msra.mxu0 %v743_v51 }
 0x360   :  { %889 = vmatprep.subr.mxu1 %v1344_v0  ;;  %832 = vmatprep.subr.mxu0 %v741_v53 }
 0x361   :  { %890 = vmatpush1.msra.mxu1 %v685_v40  ;;  %833 = vmatpush2.msra.mxu0 %v740_v54 }
 0x362   :  { %891 = vmatprep.subr.mxu1 %v1344_v0  ;;  %834 = vmatprep.subr.mxu0 %v738_v56 }
 0x363   :  { %892 = vmatpush1.msra.mxu1 %v682_v43  ;;  %835 = vmatpush2.msra.mxu0 %v737_v57 }
 0x364   :  { %909 = vmatprep.subr.mxu1 %v1344_v0  ;;  %836 = vmatprep.subr.mxu0 %v735_v59 }
 0x365   :  { %910 = vmatpush2.msra.mxu1 %v751_v46  ;;  %837 = vmatpush2.msra.mxu0 %v734_v60 }
 0x366   :  { %911 = vmatprep.subr.mxu1 %v1344_v0  ;;  %838 = vmatprep.subr.mxu0 %v732_v62 }
 0x367   :  { %912 = vmatpush2.msra.mxu1 %v748_v49  ;;  %839 = vmatpush2.msra.mxu0 %v731_v63 }
 0x368   :  { %913 = vmatprep.subr.mxu1 %v1344_v0  ;;  %840 = vmatprep.subr.mxu0 %v729_v2 }
 0x369   :  { %914 = vmatpush2.msra.mxu1 %v745_v52  ;;  %841 = vmatpush2.msra.mxu0 %v728_v3 }
 0x36a   :  { %915 = vmatprep.subr.mxu1 %v1344_v0 }
 0x36b   :  { %916 = vmatpush2.msra.mxu1 %v742_v55 }
 0x36c   :  { %917 = vmatprep.subr.mxu1 %v1344_v0 }
 0x36d   :  { %918 = vmatpush2.msra.mxu1 %v739_v58 }
 0x36e   :  { %919 = vmatprep.subr.mxu1 %v1344_v0 }
 0x36f   :  { %920 = vmatpush2.msra.mxu1 %v736_v61 }
 0x370   :  { %921 = vmatprep.subr.mxu1 %v1344_v0 }
 0x371   :  { %922 = vmatpush2.msra.mxu1 %v733_v1 }
 0x372   :  { %923 = vmatprep.subr.mxu1 %v1344_v0  ;;  %v549_v0 = vrot.slane %v540_v8, %v548_v9 }
 0x373   :  { %924 = vmatpush2.msra.mxu1 %v730_v4 }
 0x404   :  { %v627_v11 = vpop.f32.mrf.mxu1 }
 0x405   :  { %v628_v12 = vadd.f32 %v627_v11, %v545_v10 }
 0x406   :  { %v629_v13 = vpop.f32.mrf.mxu1 }
 0x407   :  { %v1031_v14 = vmul.f32 -1.442695, %v628_v12  ;;  %v630_v15 = vadd.f32 %v629_v13, %v549_v0 }
 0x408   :  { %v633_v16 = vpop.f32.mrf.mxu1 }
 0x409   :  { %1161 = vpow2.f32 %v1031_v14  ;;  %v1032_v17 = vmul.f32 -1.442695, %v630_v15  ;;  %v634_v18 = vadd.f32 %v633_v16, %v545_v10 }
 0x40a   :  { %v635_v19 = vpop.f32.mrf.mxu1 }
 0x40b   :  { %1163 = vpow2.f32 %v1032_v17  ;;  %v1033_v20 = vmul.f32 -1.442695, %v634_v18  ;;  %v636_v21 = vadd.f32 %v635_v19, %v549_v0 }
 0x40c   :  { %v639_v22 = vpop.f32.mrf.mxu1 }
 0x40d   :  { %1165 = vpow2.f32 %v1033_v20  ;;  %v1034_v23 = vmul.f32 -1.442695, %v636_v21  ;;  %v640_v24 = vadd.f32 %v639_v22, %v545_v10 }
 0x40e   :  { %v641_v25 = vpop.f32.mrf.mxu1 }
 0x40f   :  { %1167 = vpow2.f32 %v1034_v23  ;;  %v1035_v26 = vmul.f32 -1.442695, %v640_v24  ;;  %v642_v27 = vadd.f32 %v641_v25, %v549_v0 }
 0x411   :  { %1169 = vpow2.f32 %v1035_v26  ;;  %v1036_v28 = vmul.f32 -1.442695, %v642_v27 }
 0x413   :  { %1171 = vpow2.f32 %v1036_v28 }
 0x416   :  { %v1162_v29 = vpop.eup %1161 }
 0x417   :  { %v662_v31 = vadd.f32 1.0, %v1162_v29 }
 0x418   :  { %v1164_v30 = vpop.eup %1163 }
 0x419   :  { %v663_v32 = vadd.f32 1.0, %v1164_v30 }
 0x41a   :  { %v1166_v33 = vpop.eup %1165 }
 0x41b   :  { %1173 = vrcp.f32 %v663_v32  ;;  %v664_v35 = vadd.f32 1.0, %v1166_v33 }
 0x41c   :  { %v1168_v34 = vpop.eup %1167  ;;  %1175 = vrcp.f32 %v662_v31 }
 0x41d   :  { %v665_v36 = vadd.f32 1.0, %v1168_v34 }
 0x41e   :  { %v1170_v37 = vpop.eup %1169 }
 0x41f   :  { %1177 = vrcp.f32 %v665_v36  ;;  %v666_v39 = vadd.f32 1.0, %v1170_v37 }
 0x420   :  { %v1172_v38 = vpop.eup %1171  ;;  %1179 = vrcp.f32 %v664_v35 }
 0x421   :  { %v667_v40 = vadd.f32 1.0, %v1172_v38 }
 0x423   :  { %1181 = vrcp.f32 %v667_v40 }
 0x424   :  { %1183 = vrcp.f32 %v666_v39 }
 0x428   :  { %v1174_v41 = vpop.eup %1173 }
 0x429   :  { %v1176_v42 = vpop.eup %1175  ;;  %1037 = vmatprep.mubr.msk.f32.mxu0 %vm251_vm2, %v1174_v41  ;;  %1040 = vmatprep.mubr.msk.f32.mxu1 %vm251_vm2, %v1174_v41 }
 0x42a   :  { %843 = vmatmul.mubr.f32.vlgmr.msra.gmra.mxu0 %v1176_v42  ;;  %926 = vmatmul.mubr.f32.vlgmr.msra.gmra.mxu1 %v1176_v42 }
 0x42c   :  { %v1178_v43 = vpop.eup %1177 }
 0x42d   :  { %v1180_v44 = vpop.eup %1179  ;;  %1038 = vmatprep.mubr.msk.f32.mxu0 %vm251_vm2, %v1178_v43  ;;  %1041 = vmatprep.mubr.msk.f32.mxu1 %vm251_vm2, %v1178_v43 }
 0x42e   :  { %849 = vmatmul.mubr.f32.gmra.mxu0 %v1180_v44  ;;  %931 = vmatmul.mubr.f32.gmra.mxu1 %v1180_v44 }
 0x430   :  { %v1182_v45 = vpop.eup %1181 }
 0x431   :  { %v1184_v46 = vpop.eup %1183  ;;  %1039 = vmatprep.mubr.msk.f32.mxu0 %vm251_vm2, %v1182_v45  ;;  %1042 = vmatprep.mubr.msk.f32.mxu1 %vm251_vm2, %v1182_v45 }
 0x432   :  { %855 = vmatmul.mubr.f32.gmra.mxu0 %v1184_v46  ;;  %936 = vmatmul.mubr.f32.gmra.mxu1 %v1184_v46 }
 0x433   :  { %1296 = shalt.err (!%p1293_p1)
}
 0x434   :  { %981 = dma.vmem_to_hbm [thread:$0]  %s976_s25, 384, %s1684_s13, [#allocation4], %s1337_s18, %s1337_s18, %s1338_s19   ;;  %v764_v47 = vsub.s32 2, %v1631_v6 }
 0x435   :  { %v752_v48 = vld [vmem:[%s1681_s10] sm:$0x7]  ;;  %s1350_s10 = smov [#allocation12]  }
 0x436   :  { %v757_v49 = vrot.slane %v752_v48, %v544_v7  ;;  %v765_v50 = vrot.slane %v752_v48, %v764_v47  ;;  %v761_v51 = vrot.slane %v752_v48, %v548_v9  ;;  %s987_s13 = sshll.u32 %s1350_s10, 4  ;;  %s988_s13 = int_to_ptr.vmem [resolvable:$true] %s987_s13 }
 0x437   :  { %s1305_s18 = scalar_lea.vmem %s988_s13, 1152  ;;  %p1310_p3 = scmp.lt.s32.totalorder %s988_s13, %s988_s13 }
 0x438   :  { %p1306_p2 = scmp.ne.s32.totalorder %s988_s13, %s1305_s18  ;;  %p1311_p4 = scmp.lt.s32.totalorder %s1305_s18, %s1305_s18 }
 0x43a   :  { %p1312_p5 = por %p1311_p4, %p1310_p3 }
 0x43c   :  { %p1313_p6 = pnand %p1312_p5, %p1306_p2 }
 0x4ea   :  { %v844_v52 = vpop.f32.mrf.mxu0  ;;  %v927_v53 = vpop.f32.mrf.mxu1 }
 0x4eb   :  { %v845_v54 = vadd.f32 %v844_v52, %v757_v49  ;;  %v928_v55 = vadd.f32 %v927_v53, %v765_v50 }
 0x4ec   :  { %v846_v56 = vpop.f32.mrf.mxu0  ;;  %v929_v57 = vpop.f32.mrf.mxu1 }
 0x4ed   :  { %v941_v58 = vmax.f32 %v845_v54, 1e-08  ;;  %v943_v59 = vmax.f32 %v928_v55, 1e-08  ;;  %v847_v60 = vadd.f32 %v846_v56, %v761_v51 }
 0x4ee   :  { %v850_v61 = vpop.f32.mrf.mxu0  ;;  %v932_v62 = vpop.f32.mrf.mxu1 }
 0x4ef   :  { %v950_v63 = vmin.f32 %v941_v58, 1.0  ;;  %v952_v1 = vmin.f32 %v943_v59, 1.0  ;;  %v942_v2 = vmax.f32 %v847_v60, 1e-08  ;;  %v851_v3 = vadd.f32 %v850_v61, %v757_v49 }
 0x4f0   :  { %v933_v4 = vadd.f32 %v932_v62, %v765_v50  ;;  %v852_v5 = vpop.f32.mrf.mxu0  ;;  %v934_v7 = vpop.f32.mrf.mxu1 }
 0x4f1   :  { %959 = vst [vmem:[#allocation12] sm:$0xff] %v950_v63  ;;  %961 = vst.msk [vmem:[#allocation12 + $0x10] sm:$0xff] %vm128_vm1, %v952_v1  ;;  %v951_v6 = vmin.f32 %v942_v2, 1.0  ;;  %v944_v8 = vmax.f32 %v851_v3, 1e-08  ;;  %v853_v9 = vadd.f32 %v852_v5, %v761_v51 }
 0x4f2   :  { %v946_v10 = vmax.f32 %v933_v4, 1e-08  ;;  %v856_v0 = vpop.f32.mrf.mxu0  ;;  %v937_v11 = vpop.f32.mrf.mxu1 }
 0x4f3   :  { %960 = vst [vmem:[#allocation12 + $0x8] sm:$0xff] %v951_v6  ;;  %v953_v12 = vmin.f32 %v944_v8, 1.0  ;;  %v945_v13 = vmax.f32 %v853_v9, 1e-08  ;;  %v857_v14 = vadd.f32 %v856_v0, %v757_v49  ;;  %v938_v15 = vadd.f32 %v937_v11, %v765_v50 }
 0x4f4   :  { %v955_v16 = vmin.f32 %v946_v10, 1.0  ;;  %v858_v17 = vpop.f32.mrf.mxu0  ;;  %v939_v18 = vpop.f32.mrf.mxu1 }
 0x4f5   :  { %962 = vst [vmem:[#allocation12 + $0x18] sm:$0xff] %v953_v12  ;;  %v954_v19 = vmin.f32 %v945_v13, 1.0  ;;  %v947_v20 = vmax.f32 %v857_v14, 1e-08  ;;  %v949_v21 = vmax.f32 %v938_v15, 1e-08  ;;  %v859_v22 = vadd.f32 %v858_v17, %v761_v51 }
 0x4f6   :  { %964 = vst.msk [vmem:[#allocation12 + $0x28] sm:$0xff] %vm128_vm1, %v955_v16 }
 0x4f7   :  { %963 = vst [vmem:[#allocation12 + $0x20] sm:$0xff] %v954_v19  ;;  %v956_v23 = vmin.f32 %v947_v20, 1.0  ;;  %v958_v24 = vmin.f32 %v949_v21, 1.0  ;;  %v948_v25 = vmax.f32 %v859_v22, 1e-08 }
 0x4f9   :  { %965 = vst [vmem:[#allocation12 + $0x30] sm:$0xff] %v956_v23  ;;  %967 = vst.msk [vmem:[#allocation12 + $0x40] sm:$0xff] %vm128_vm1, %v958_v24  ;;  %v957_v26 = vmin.f32 %v948_v25, 1.0 }
 0x4fb   :  { %966 = vst [vmem:[#allocation12 + $0x38] sm:$0xff] %v957_v26 }
 0x4fc   :  { %1316 = shalt.err (!%p1313_p6)
}
 0x4fd   :  { %993 = dma.vmem_to_hbm [thread:$0]  %s988_s13, 1152, %s1685_s14, [#allocation13], %s1339_s23, %s1339_s23, %s1340_s24  }
 0x4fe   :  { %1331 = dma.done.wait [#allocation4], 384  }
 0x4ff   :  { %1332 = vsyncadd [#allocation4], 4294966912 }
 0x500   :  { %1333 = dma.done.wait [#allocation13], 1152  }
 0x501   :  { %1334 = vsyncadd [#allocation13], 4294966144 }
 0x502   :  { %1002 = vsyncpa [#allocation3], 1 }
 0x503   :  { %1003 = vsyncpa [#allocation6], 1 }
 0x504   :  { %1004 = vsyncpa [#allocation9], 1 }
 0x505   :  { %1005 = vsyncpa [#allocation4], 1 }
 0x506   :  { %1006 = vsyncpa [#allocation13], 1 }

</bundles_post_ra>
